<compile_context>
chip_gen: v7x
topology: tpu7x:2x2x1
jax: 0.10.0
libtpu: 0.0.40
codegen_flags: <defaults>
</compile_context>

<pallas_src>
import functools

import jax
import jax.numpy as jnp
from jax import lax
from jax.experimental import pallas as pl
from jax.experimental.pallas import tpu as pltpu

IN_NEWS = 320     # news feature width (Linear(320, 32))
HID = 32          # hidden width
N_PRICE = 3       # price features / Linear(32, 3) output width
PAD = 128         # lane padding for the 3-wide hidden dim

# Rows of the packed (8, 128) constant array.
ROW_B1 = 0        # lanes 0..31 : bias of Linear(320, 32)
ROW_B2 = 1        # lanes 0..2  : bias of Linear(32, 3)           (rest zero)
ROW_WPN = 2       # lanes 0..2  : predict weights for the news features
ROW_WPP = 3       # rows 3..5, lane 0 : predict weights for the price features
ROW_BP = 6        # lane 0      : predict bias


def _score2predict_kernel(news_ref, priceT_ref, w1_ref, w2_ref, cst_ref, out_ref):
    news = news_ref[...].astype(jnp.float32)                # bf16 stream -> f32 (VPU)

    # feature_down: Linear(320, 32) + ReLU                                     (MXU)
    h1 = jnp.dot(news, w1_ref[...], preferred_element_type=jnp.float32)
    h1 = jnp.maximum(h1 + cst_ref[ROW_B1:ROW_B1 + 1, :HID], 0.0)              # (tb, 32)

    # feature_down: Linear(32, 3) + ReLU, padded to 128 lanes                  (MXU)
    # (cols 3..127 of w2 / b2 are zero, so padded lanes stay exactly 0 after ReLU.)
    h2 = jnp.dot(h1, w2_ref[...], preferred_element_type=jnp.float32)
    h2 = jnp.maximum(h2 + cst_ref[ROW_B2:ROW_B2 + 1, :], 0.0)                 # (tb, 128)

    # predict (news half), produced directly as a lane-dense row:
    #   cst (8,128) @ h2^T (128,tb) -> (8, tb); row ROW_WPN equals
    #   sum_j wp[:3][j] * h2[:, j] per batch row; the other rows are discarded.
    rows = lax.dot_general(cst_ref[...], h2, (((1,), (1,)), ((), ())),
                           preferred_element_type=jnp.float32)                # (8, tb)
    news_row = rows[ROW_WPN:ROW_WPN + 1, :]                                   # (1, tb)

    # predict (price half): priceT is (3, tb); wp[3:] broadcasts as a column.
    price_row = jnp.sum(priceT_ref[...] * cst_ref[ROW_WPP:ROW_WPP + N_PRICE, 0:1],
                        axis=0, keepdims=True)                                # (1, tb)

    out_ref[0] = news_row + price_row + cst_ref[ROW_BP:ROW_BP + 1, 0:1]       # (1, tb)


def prepare_params(params):
    """Pad / pack the weights once, outside the per-call hot path."""
    f32 = lambda a: jnp.asarray(a, jnp.float32)
    w1 = f32(params["w1"])                                 # (320, 32)
    w2 = f32(params["w2"])                                 # (32, 3)
    wp = f32(params["wp"])                                 # (6,)

    w2_pad = jnp.zeros((HID, PAD), jnp.float32).at[:, :N_PRICE].set(w2)
    cst = jnp.zeros((8, PAD), jnp.float32)
    cst = cst.at[ROW_B1, :HID].set(f32(params["b1"]))
    cst = cst.at[ROW_B2, :N_PRICE].set(f32(params["b2"]))
    cst = cst.at[ROW_WPN, :N_PRICE].set(wp[:N_PRICE])
    cst = cst.at[ROW_WPP:ROW_WPP + N_PRICE, 0].set(wp[N_PRICE:])
    cst = cst.at[ROW_BP, 0].set(f32(params["bp"]).reshape(()))
    return (w1, w2_pad, cst)


def score2predict_forward(news, price, prepped, *, tb=4096):
    """news: (B, ...) flattening to (B, 320), f32 or bf16; price: (B, ...) -> (B, 3)."""
    B = news.shape[0]
    news2d = news.reshape(B, -1)
    if news2d.dtype != jnp.bfloat16:       # keep a bf16 producer's stream at half width
        news2d = news2d.astype(jnp.float32)
    priceT = price.reshape(B, -1).astype(jnp.float32).T    # (3, B): lane-dense DMA lines

    w1, w2_pad, cst = prepped

    # Batch tile: small batches use a single full block (block == full dims, so no
    # (8,128) divisibility constraints); bigger batches use a multiple-of-128 tile
    # capped so grid >= 2 (both v7x TensorCores get grid steps).
    if B < 256:
        tb_eff = B
    else:
        tb_cap = max(128, (int(tb) // 128) * 128)
        tb_eff = min(tb_cap, pl.cdiv(pl.cdiv(B, 2), 128) * 128)
    grid_n = pl.cdiv(B, tb_eff)

    cost = pl.CostEstimate(
        flops=2 * grid_n * tb_eff * (IN_NEWS * HID + HID * PAD + 8 * PAD + N_PRICE),
        transcendentals=0,
        bytes_accessed=(news2d.size * news2d.dtype.itemsize
                        + 4 * (priceT.size + grid_n * tb_eff
                               + w1.size + w2_pad.size + cst.size)),
    )

    out = pl.pallas_call(
        _score2predict_kernel,
        out_shape=jax.ShapeDtypeStruct((grid_n, 1, tb_eff), jnp.float32),
        grid=(grid_n,),
        in_specs=[
            pl.BlockSpec((tb_eff, IN_NEWS), lambda i: (i, 0)),   # news tile (streamed)
            pl.BlockSpec((N_PRICE, tb_eff), lambda i: (0, i)),   # price, transposed
            pl.BlockSpec((IN_NEWS, HID), lambda i: (0, 0)),      # w1 (VMEM-resident)
            pl.BlockSpec((HID, PAD), lambda i: (0, 0)),          # w2 padded to 128 lanes
            pl.BlockSpec((8, PAD), lambda i: (0, 0)),            # packed constants
        ],
        out_specs=pl.BlockSpec((1, 1, tb_eff), lambda i: (i, 0, 0)),
        compiler_params=pltpu.CompilerParams(
            dimension_semantics=("parallel",),
            vmem_limit_bytes=48 * 1024 * 1024),
        cost_estimate=cost,
    )(news2d, priceT, w1, w2_pad, cst)

    return out.reshape(-1)[:B]     # torch.flatten(x)


def _reference(news, price, params):
    B = news.shape[0]
    n = news.reshape(B, -1).astype(jnp.float32)
    p = price.reshape(B, -1).astype(jnp.float32)
    h = jnp.maximum(n @ params["w1"] + params["b1"], 0.0)
    h = jnp.maximum(h @ params["w2"] + params["b2"], 0.0)
    x = jnp.concatenate([h, p], axis=1)
    return (x @ params["wp"] + params["bp"][0]).reshape(-1)


def init_params(key):
    ks = jax.random.split(key, 5)
    # Deterministic synthetic init (uniform, roughly PyTorch Linear scale).
    def u(k, shape, fan_in):
        bound = 1.0 / jnp.sqrt(fan_in)
        return jax.random.uniform(k, shape, jnp.float32, -bound, bound)
    return {
        "w1": u(ks[0], (IN_NEWS, HID), IN_NEWS),
        "b1": u(ks[1], (HID,), IN_NEWS),
        "w2": u(ks[2], (HID, N_PRICE), HID),
        "b2": u(ks[3], (N_PRICE,), HID),
        "wp": u(ks[4], (2 * N_PRICE,), 2 * N_PRICE),
        "bp": jnp.array([0.1], jnp.float32),
    }


if __name__ == "__main__":
    key = jax.random.PRNGKey(0)
    kp, kn, kpr = jax.random.split(key, 3)
    params = init_params(kp)
    prepped = prepare_params(params)   # padded / packed weights built once

    # Case 1: small batch, single tile (grid=1), f32 news.
    B = 8
    news = jax.random.normal(kn, (B, 10, 32), jnp.float32)   # flattens to (B, 320)
    price = jax.random.normal(kpr, (B, 3), jnp.float32)      # flattens to (B, 3)
    fwd = jax.jit(functools.partial(score2predict_forward, tb=4096))
    out = jax.block_until_ready(fwd(news, price, prepped))
    ref = _reference(news, price, params)
    assert out.shape == (B,)
    assert jnp.allclose(out, ref, atol=1e-4, rtol=1e-4), (out, ref)

    # Case 2: multi-tile path (grid=2) with a ragged tail (no jnp.pad anywhere)
    # and a bf16 news stream (half the HBM bytes of the dominant operand).
    B2 = 300
    news2 = jax.random.normal(kn, (B2, 10, 32), jnp.float32).astype(jnp.bfloat16)
    price2 = jax.random.normal(kpr, (B2, 3), jnp.float32)
    out2 = jax.block_until_ready(
        jax.jit(functools.partial(score2predict_forward, tb=4096))(news2, price2, prepped))
    ref2 = _reference(news2.astype(jnp.float32), price2, params)
    assert out2.shape == (B2,)
    assert jnp.allclose(out2, ref2, atol=1e-4, rtol=1e-4), (out2, ref2)

    print("KERNEL_OK")
</pallas_src>

<mosaic_0001>
module attributes {stable_mosaic.version = 11 : i64} {
  func.func @_score2predict_kernel(%arg0: i32, %arg1: memref<8x320xf32, #tpu.memory_space<vmem>>, %arg2: memref<3x8xf32, #tpu.memory_space<vmem>>, %arg3: memref<320x32xf32, #tpu.memory_space<vmem>>, %arg4: memref<32x128xf32, #tpu.memory_space<vmem>>, %arg5: memref<8x128xf32, #tpu.memory_space<vmem>>, %arg6: memref<1x1x8xf32, #tpu.memory_space<vmem>>) attributes {dimension_semantics = [#tpu.dimension_semantics<parallel>], iteration_bounds = array<i64: 1>, scalar_prefetch = 0 : i64, scratch_operands = 0 : i64, tpu.core_type = #tpu.core_type<tc>, window_params = [{transform_indices = @transform_0, window_bounds = array<i64: 8, 320>}, {transform_indices = @transform_1, window_bounds = array<i64: 3, 8>}, {pipeline_mode = #tpu.pipeline_mode<synchronous>, transform_indices = @transform_2, window_bounds = array<i64: 320, 32>}, {pipeline_mode = #tpu.pipeline_mode<synchronous>, transform_indices = @transform_3, window_bounds = array<i64: 32, 128>}, {pipeline_mode = #tpu.pipeline_mode<synchronous>, transform_indices = @transform_4, window_bounds = array<i64: 8, 128>}, {transform_indices = @transform_5, window_bounds = array<i64: 1, 1, 8>}]} {
    %c0 = arith.constant 0 : index
    %c0_0 = arith.constant 0 : index
    %0 = vector.load %arg1[%c0, %c0_0] : memref<8x320xf32, #tpu.memory_space<vmem>>, vector<8x320xf32>
    %c0_1 = arith.constant 0 : index
    %c0_2 = arith.constant 0 : index
    %1 = vector.load %arg3[%c0_1, %c0_2] : memref<320x32xf32, #tpu.memory_space<vmem>>, vector<320x32xf32>
    %cst = arith.constant dense<0.000000e+00> : vector<8x32xf32>
    %2 = tpu.matmul %0, %1, %cst {dimension_numbers = #tpu.dot_dimension_numbers<[1], [0], [0], [1], [0, 0, 1, 1], [], []>} : vector<8x320xf32>, vector<320x32xf32>, vector<8x32xf32> -> vector<8x32xf32>
    %c0_3 = arith.constant 0 : index
    %c0_4 = arith.constant 0 : index
    %3 = vector.load %arg5[%c0_3, %c0_4] : memref<8x128xf32, #tpu.memory_space<vmem>>, vector<1x32xf32>
    %4 = vector.broadcast %3 : vector<1x32xf32> to vector<8x32xf32>
    %5 = arith.addf %2, %4 : vector<8x32xf32>
    %cst_5 = arith.constant 0.000000e+00 : f32
    %6 = vector.broadcast %cst_5 : f32 to vector<8x32xf32>
    %7 = arith.maximumf %5, %6 : vector<8x32xf32>
    %c0_6 = arith.constant 0 : index
    %c0_7 = arith.constant 0 : index
    %8 = vector.load %arg4[%c0_6, %c0_7] : memref<32x128xf32, #tpu.memory_space<vmem>>, vector<32x128xf32>
    %cst_8 = arith.constant dense<0.000000e+00> : vector<8x128xf32>
    %9 = tpu.matmul %7, %8, %cst_8 {dimension_numbers = #tpu.dot_dimension_numbers<[1], [0], [0], [1], [0, 0, 1, 1], [], []>} : vector<8x32xf32>, vector<32x128xf32>, vector<8x128xf32> -> vector<8x128xf32>
    %c1 = arith.constant 1 : index
    %c0_9 = arith.constant 0 : index
    %10 = vector.load %arg5[%c1, %c0_9] : memref<8x128xf32, #tpu.memory_space<vmem>>, vector<1x128xf32>
    %11 = vector.broadcast %10 : vector<1x128xf32> to vector<8x128xf32>
    %12 = arith.addf %9, %11 : vector<8x128xf32>
    %cst_10 = arith.constant 0.000000e+00 : f32
    %13 = vector.broadcast %cst_10 : f32 to vector<8x128xf32>
    %14 = arith.maximumf %12, %13 : vector<8x128xf32>
    %c0_11 = arith.constant 0 : index
    %c0_12 = arith.constant 0 : index
    %15 = vector.load %arg5[%c0_11, %c0_12] : memref<8x128xf32, #tpu.memory_space<vmem>>, vector<8x128xf32>
    %cst_13 = arith.constant dense<0.000000e+00> : vector<8x8xf32>
    %16 = tpu.matmul %15, %14, %cst_13 {dimension_numbers = #tpu.dot_dimension_numbers<[1], [1], [0], [0], [0, 0, 1, 0], [], []>} : vector<8x128xf32>, vector<8x128xf32>, vector<8x8xf32> -> vector<8x8xf32>
    %17 = vector.extract_strided_slice %16 {offsets = [2, 0], sizes = [1, 8], strides = [1, 1]} : vector<8x8xf32> to vector<1x8xf32>
    %c0_14 = arith.constant 0 : index
    %c0_15 = arith.constant 0 : index
    %18 = vector.load %arg2[%c0_14, %c0_15] : memref<3x8xf32, #tpu.memory_space<vmem>>, vector<3x8xf32>
    %c3 = arith.constant 3 : index
    %c0_16 = arith.constant 0 : index
    %19 = vector.load %arg5[%c3, %c0_16] : memref<8x128xf32, #tpu.memory_space<vmem>>, vector<3x1xf32>
    %20 = vector.broadcast %19 : vector<3x1xf32> to vector<3x8xf32>
    %21 = arith.mulf %18, %20 : vector<3x8xf32>
    %cst_17 = arith.constant dense<0.000000e+00> : vector<8xf32>
    %22 = vector.multi_reduction <add>, %21, %cst_17 [0] : vector<3x8xf32> to vector<8xf32>
    %23 = vector.shape_cast %22 : vector<8xf32> to vector<1x8xf32>
    %24 = arith.addf %17, %23 : vector<1x8xf32>
    %c6 = arith.constant 6 : index
    %c0_18 = arith.constant 0 : index
    %25 = vector.load %arg5[%c6, %c0_18] : memref<8x128xf32, #tpu.memory_space<vmem>>, vector<1x1xf32>
    %26 = vector.broadcast %25 : vector<1x1xf32> to vector<1x8xf32>
    %27 = arith.addf %24, %26 : vector<1x8xf32>
    %c0_19 = arith.constant 0 : index
    %c0_20 = arith.constant 0 : index
    %c0_21 = arith.constant 0 : index
    %28 = vector.load %arg6[%c0_19, %c0_20, %c0_21] : memref<1x1x8xf32, #tpu.memory_space<vmem>>, vector<1x1x8xf32>
    %29 = vector.shape_cast %28 : vector<1x1x8xf32> to vector<1x8xf32>
    %30 = vector.shape_cast %27 : vector<1x8xf32> to vector<1x1x8xf32>
    tpu.vector_store %arg6[%c0_19, %c0_20, %c0_21], %30 {strides = array<i32>} : memref<1x1x8xf32, #tpu.memory_space<vmem>>, vector<1x1x8xf32>,
    return
  }
  func.func @transform_0(%arg0: i32) -> (i32, i32) {
    %c0_i32 = arith.constant 0 : i32
    %c0_i32_0 = arith.constant 0 : i32
    return %arg0, %c0_i32 : i32, i32
  }
  func.func @transform_1(%arg0: i32) -> (i32, i32) {
    %c0_i32 = arith.constant 0 : i32
    %c0_i32_0 = arith.constant 0 : i32
    return %c0_i32, %arg0 : i32, i32
  }
  func.func @transform_2(%arg0: i32) -> (i32, i32) {
    %c0_i32 = arith.constant 0 : i32
    %c0_i32_0 = arith.constant 0 : i32
    %c0_i32_1 = arith.constant 0 : i32
    return %c0_i32, %c0_i32_0 : i32, i32
  }
  func.func @transform_3(%arg0: i32) -> (i32, i32) {
    %c0_i32 = arith.constant 0 : i32
    %c0_i32_0 = arith.constant 0 : i32
    %c0_i32_1 = arith.constant 0 : i32
    return %c0_i32, %c0_i32_0 : i32, i32
  }
  func.func @transform_4(%arg0: i32) -> (i32, i32) {
    %c0_i32 = arith.constant 0 : i32
    %c0_i32_0 = arith.constant 0 : i32
    %c0_i32_1 = arith.constant 0 : i32
    return %c0_i32, %c0_i32_0 : i32, i32
  }
  func.func @transform_5(%arg0: i32) -> (i32, i32, i32) {
    %c0_i32 = arith.constant 0 : i32
    %c0_i32_0 = arith.constant 0 : i32
    %c0_i32_1 = arith.constant 0 : i32
    return %arg0, %c0_i32, %c0_i32_0 : i32, i32, i32
  }
}

</mosaic_0001>

<bundles_post_ra>
// kernel: score2predict_forward.1
= control target key start
LH: loop header
LB: loop body
LE: loop exit
PB: predicated region body
PF: predicated region fallthrough
CT: control target
= control target key end

     0   :  { %v580_v7 = vmov 0.0|0.0   ;;  %vm581_vm0 = vmmov 0   ;;  %v582_v8 = vmov 0.0   ;;  %s799_s0 = inlined_call_operand.vmem [shape: f32[8,320], index: 0, kind: input, shape index: {}]   ;;  %s800_s1 = inlined_call_operand.vmem [shape: f32[3,8], index: 1, kind: input, shape index: {}]   ;;  %s801_s2 = inlined_call_operand.vmem [shape: f32[320,32], index: 2, kind: input, shape index: {}]   ;;  %s802_s3 = inlined_call_operand.vmem [shape: f32[32,128], index: 3, kind: input, shape index: {}]   ;;  %s803_s4 = inlined_call_operand.vmem [shape: f32[8,128], index: 4, kind: input, shape index: {}]   ;;  %s804_s5 = inlined_call_operand.hbm [shape: f32[1,1,8], index: 5, kind: output, shape index: {}]  }
   0x1   :  { %v40_v0 = vld [vmem:[%s801_s2 + $0x80] sm:$0xff]  ;;  %v41_v1 = vld [vmem:[%s801_s2 + $0x88] sm:$0xff]  ;;  %v42_v5 = vld [vmem:[%s801_s2 + $0x90] sm:$0xff]  ;;  %532 = vmatprep.subr.bf16.mxu1 %v580_v7  ;;  %481 = vmatprep.mubr.msk.f32.mxu1 %vm581_vm0, %v582_v8 }
   0x2   :  { %v24_v2 = vld [vmem:[%s801_s2] sm:$0xff]  ;;  %v500_v3 = vpack.c.bf16 %v41_v1, %v40_v0  ;;  %v25_v4 = vld [vmem:[%s801_s2 + $0x8] sm:$0xff]  ;;  %v43_v6 = vld [vmem:[%s801_s2 + $0x98] sm:$0xff] }
   0x3   :  { %v502_v9 = vpack.c.bf16 %v25_v4, %v24_v2  ;;  %v504_v10 = vpack.c.bf16 %v43_v6, %v42_v5  ;;  %v26_v11 = vld [vmem:[%s801_s2 + $0x10] sm:$0xff]  ;;  %v27_v12 = vld [vmem:[%s801_s2 + $0x18] sm:$0xff]  ;;  %v44_v13 = vld [vmem:[%s801_s2 + $0xa0] sm:$0xff] }
   0x4   :  { %501 = vmatprep.subr.bf16.mxu0 %v500_v3  ;;  %v45_v14 = vld [vmem:[%s801_s2 + $0xa8] sm:$0xff]  ;;  %v506_v15 = vpack.c.bf16 %v27_v12, %v26_v11  ;;  %v28_v17 = vld [vmem:[%s801_s2 + $0x20] sm:$0xff]  ;;  %v46_v19 = vld [vmem:[%s801_s2 + $0xb0] sm:$0xff] }
   0x5   :  { %503 = vmatpush3.bf16.msra.mxu0 %v502_v9  ;;  %v508_v16 = vpack.c.bf16 %v45_v14, %v44_v13  ;;  %v29_v18 = vld [vmem:[%s801_s2 + $0x28] sm:$0xff]  ;;  %v47_v20 = vld [vmem:[%s801_s2 + $0xb8] sm:$0xff]  ;;  %v56_v22 = vld [vmem:[%s801_s2 + $0x100] sm:$0xff] }
   0x6   :  { %505 = vmatprep.subr.bf16.mxu0 %v504_v10  ;;  %v510_v21 = vpack.c.bf16 %v29_v18, %v28_v17  ;;  %v57_v23 = vld [vmem:[%s801_s2 + $0x108] sm:$0xff]  ;;  %v512_v24 = vpack.c.bf16 %v47_v20, %v46_v19  ;;  %v30_v25 = vld [vmem:[%s801_s2 + $0x30] sm:$0xff]  ;;  %v31_v26 = vld [vmem:[%s801_s2 + $0x38] sm:$0xff] }
   0x7   :  { %v48_v27 = vld [vmem:[%s801_s2 + $0xc0] sm:$0xff]  ;;  %v533_v28 = vpack.c.bf16 %v57_v23, %v56_v22  ;;  %v49_v29 = vld [vmem:[%s801_s2 + $0xc8] sm:$0xff]  ;;  %v58_v30 = vld [vmem:[%s801_s2 + $0x110] sm:$0xff]  ;;  %v514_v33 = vpack.c.bf16 %v31_v26, %v30_v25 }
   0x8   :  { %v59_v31 = vld [vmem:[%s801_s2 + $0x118] sm:$0xff]  ;;  %v60_v34 = vld [vmem:[%s801_s2 + $0x120] sm:$0xff]  ;;  %v61_v35 = vld [vmem:[%s801_s2 + $0x128] sm:$0xff]  ;;  %v516_v37 = vpack.c.bf16 %v49_v29, %v48_v27 }
   0x9   :  { %507 = vmatpush3.bf16.msra.mxu0 %v506_v15  ;;  %534 = vmatpush3.bf16.msra.mxu1 %v533_v28  ;;  %v536_v32 = vpack.c.bf16 %v59_v31, %v58_v30  ;;  %v22_v36 = vld [vmem:[%s799_s0 + $0x8] sm:$0xff]  ;;  %v32_v38 = vld [vmem:[%s801_s2 + $0x40] sm:$0xff]  ;;  %v50_v40 = vld [vmem:[%s801_s2 + $0xd0] sm:$0xff] }
   0xa   :  { %509 = vmatprep.subr.bf16.mxu0 %v508_v16  ;;  %535 = vmatprep.subr.bf16.mxu1 %v580_v7  ;;  %v33_v39 = vld [vmem:[%s801_s2 + $0x48] sm:$0xff]  ;;  %v51_v41 = vld [vmem:[%s801_s2 + $0xd8] sm:$0xff] }
   0xb   :  { %137 = vmatprep.mubr.f32.mxu0 %v22_v36 }
   0xd   :  { %511 = vmatpush3.bf16.msra.mxu0 %v510_v21 }
   0xe   :  { %513 = vmatprep.subr.bf16.mxu0 %v512_v24 }
   0xf   :  { %10 = vsyncpa [#allocation3], 0  ;;  %537 = vmatpush3.bf16.msra.mxu1 %v536_v32  ;;  %v539_v42 = vpack.c.bf16 %v61_v35, %v60_v34  ;;  %v518_v43 = vpack.c.bf16 %v33_v39, %v32_v38  ;;  %v62_v44 = vld [vmem:[%s801_s2 + $0x130] sm:$0xff]  ;;  %v63_v45 = vld [vmem:[%s801_s2 + $0x138] sm:$0xff]  ;;  %v520_v46 = vpack.c.bf16 %v51_v41, %v50_v40  ;;  %vm69_vm1 = vcmask 523264   ;;  %s584_s21 = smov [#allocation2]  }
  0x10   :  { %538 = vmatprep.subr.bf16.mxu1 %v580_v7  ;;  %v34_v47 = vld [vmem:[%s801_s2 + $0x50] sm:$0xff]  ;;  %v35_v48 = vld [vmem:[%s801_s2 + $0x58] sm:$0xff]  ;;  %v52_v49 = vld [vmem:[%s801_s2 + $0xe0] sm:$0xff]  ;;  %v542_v51 = vpack.c.bf16 %v63_v45, %v62_v44  ;;  %vm223_vm2 = vcmask 261120   ;;  %v583_v18 = vmov 0   ;;  %vm377_vm3 = vcmask 59392  }
  0x11   :  { %515 = vmatpush3.bf16.msra.mxu0 %v514_v33  ;;  %v53_v50 = vld [vmem:[%s801_s2 + $0xe8] sm:$0xff]  ;;  %v522_v52 = vpack.c.bf16 %v35_v48, %v34_v47  ;;  %v36_v54 = vld [vmem:[%s801_s2 + $0x60] sm:$0xff]  ;;  %v54_v56 = vld [vmem:[%s801_s2 + $0xf0] sm:$0xff]  ;;  %555 = vset.pattern.permute.xlu0 %v583_v18  ;;  %s402_s22 = sshll.u32 %s584_s21, 4  ;;  %vm394_vm4 = vcmask 59394   ;;  %s403_s22 = int_to_ptr.vmem [resolvable:$true] %s402_s22 }
  0x12   :  { %517 = vmatprep.subr.bf16.mxu0 %v516_v37  ;;  %v524_v53 = vpack.c.bf16 %v53_v50, %v52_v49  ;;  %v37_v55 = vld [vmem:[%s801_s2 + $0x68] sm:$0xff]  ;;  %v55_v57 = vld [vmem:[%s801_s2 + $0xf8] sm:$0xff]  ;;  %v23_v58 = vld [vmem:[%s799_s0 + $0x10] sm:$0xff]  ;;  %p561_p1 = scmp.lt.s32.totalorder %s403_s22, %s403_s22 }
  0x13   :  { %540 = vmatpush3.bf16.msra.mxu1 %v539_v42  ;;  %v526_v59 = vpack.c.bf16 %v37_v55, %v36_v54  ;;  %v528_v60 = vpack.c.bf16 %v55_v57, %v54_v56  ;;  %v38_v61 = vld [vmem:[%s801_s2 + $0x70] sm:$0xff]  ;;  %v39_v62 = vld [vmem:[%s801_s2 + $0x78] sm:$0xff]  ;;  %v21_v0 = vld [vmem:[%s799_s0] sm:$0xff] }
  0x14   :  { %541 = vmatprep.subr.bf16.mxu1 %v580_v7  ;;  %v530_v63 = vpack.c.bf16 %v39_v62, %v38_v61  ;;  %v214_v1 = vld [vmem:[%s802_s3] sm:$0xff]  ;;  %v215_v2 = vld [vmem:[%s802_s3 + $0x8] sm:$0xff]  ;;  %v216_v4 = vld [vmem:[%s802_s3 + $0x10] sm:$0xff] }
  0x15   :  { %519 = vmatpush3.bf16.msra.mxu0 %v518_v43  ;;  %v545_v3 = vpack.c.bf16 %v215_v2, %v214_v1  ;;  %v217_v5 = vld [vmem:[%s802_s3 + $0x18] sm:$0xff]  ;;  %v370_v17 = vld [vmem:[%s803_s4 + $0x3] sm:$0x7]  ;;  %v386_v19 = vld [vmem:[%s803_s4 + $0x6] sm:$0x1] }
  0x16   :  { %521 = vmatprep.subr.bf16.mxu0 %v520_v46  ;;  %v548_v6 = vpack.c.bf16 %v217_v5, %v216_v4  ;;  %373 = vperm.xlu0 %555, %v370_v17   ;;  %v412_v20 = vld [vmem:[%s803_s4 + $0x1] ss:$0 sm:$0xff] }
  0x17   :  { %543 = vmatpush3.bf16.msra.mxu1 %v542_v51  ;;  %v298_v24 = vld [vmem:[%s803_s4] sm:$0xff] }
  0x18   :  { %544 = vmatprep.subr.bf16.mxu1 %v580_v7  ;;  %v369_v26 = vld [vmem:[%s800_s1] sm:$0x7]  ;;  %s556_s1 = scalar_lea.vmem %s403_s22, 16 }
  0x19   :  { %523 = vmatpush3.bf16.msra.mxu0 %v522_v52  ;;  %p557_p0 = scmp.ne.s32.totalorder %s403_s22, %s556_s1 }
  0x1a   :  { %525 = vmatprep.subr.bf16.mxu0 %v524_v53  ;;  %482 = vmatmul.mubr.msk.f32.vlgmr.msra.gmra.mrb[0].mxu1 %vm69_vm1, %v23_v58 }
  0x1b   :  { %492 = vmatprep.mubr.msk.f32.mxu1 %vm581_vm0, %v582_v8  ;;  %546 = vmatpush3.bf16.msra.mxu1 %v545_v3 }
  0x1c   :  { %547 = vmatprep.subr.bf16.mxu1 %v580_v7  ;;  %v410_v7 = vld [vmem:[%s803_s4] ss:$0 sm:$0xff]  ;;  %389 = vperm.xlu0 %555, %v386_v19   ;;  %s560_s4 = scalar_lea.vmem %s403_s22, 32 }
  0x1d   :  { %527 = vmatpush3.bf16.msra.mxu0 %v526_v59  ;;  %p562_p2 = scmp.lt.s32.totalorder %s560_s4, %s556_s1 }
  0x1e   :  { %529 = vmatprep.subr.bf16.mxu0 %v528_v60 }
  0x1f   :  { %549 = vmatpush3.bf16.msra.mxu1 %v548_v6  ;;  %p563_p3 = por %p562_p2, %p561_p1 }
  0x20   :  { %495 = vmatprep.subr.mxu1 %v582_v8 }
  0x21   :  { %531 = vmatpush3.bf16.msra.mxu0 %v530_v63  ;;  %p564_p4 = pnand %p563_p3, %p557_p0 }
  0x24   :  { %138 = vmatmul.mubr.f32.vlgmr.msra.gmra.mrb[0].mxu0 %v21_v0 }
  0x95   :  { %v374_v25 = vpop.permute.xlu0 %373 }
  0x96   :  { %v376_v27 = vmul.f32 %v374_v25, %v369_v26 }
  0x98   :  { %v378_v28 = vsel %vm377_vm3, %v376_v27, 0.0 }
  0x99   :  { %v379_v29 = vrot.slane %v378_v28, 4 }
  0x9b   :  { %v380_v30 = vadd.f32 %v379_v29, %v378_v28  ;;  %v390_v34 = vpop.permute.xlu0 %389 }
  0x9c   :  { %v391_v37 = vrot.slane %v390_v34, 6 }
  0x9d   :  { %v381_v31 = vrot.slane %v380_v30, 2 }
  0x9f   :  { %v382_v32 = vadd.f32 %v381_v31, %v380_v30 }
  0xa1   :  { %v383_v33 = vrot.slane %v382_v32, 1 }
  0xa3   :  { %v384_v35 = vadd.f32 %v383_v33, %v382_v32 }
  0xed   :  { %v209_v9 = vpop.f32.mrb[0].mxu1 }
  0xee   :  { %v483_v10 = vpop.f32.mrb[1].mxu1 }
  0xf7   :  { %v446_v11 = vpop.f32.mrb[0].mxu0 }
  0xf8   :  { %v447_v12 = vpop.f32.mrb[1].mxu0 }
  0xf9   :  { %v448_v13 = vadd.f32 %v447_v12, %v446_v11 }
  0xfb   :  { %v140_v14 = vadd.f32 %v448_v13, %v410_v7 }
  0xfd   :  { %v210_v15 = vadd.f32 %v209_v9, %v140_v14 }
  0xff   :  { %v213_v16 = vmax.f32 %v210_v15, 0.0 }
 0x101   :  { %493 = vmatmul.mubr.msk.f32.vlgmr.msra.gmra.mrb[2].mxu1 %vm223_vm2, %v213_v16 }
 0x102   :  { %497 = vmatprep.mubr.msk.f32.mxu1 %vm581_vm0, %v582_v8 }
 0x1d4   :  { %v293_v21 = vpop.f32.mrb[2].mxu1 }
 0x1d5   :  { %v294_v22 = vadd.f32 %v412_v20, %v293_v21  ;;  %v494_v23 = vpop.f32.mrb[3].mxu1 }
 0x1d7   :  { %v297_v8 = vmax.f32 %v294_v22, 0.0 }
 0x1d9   :  { %496 = vmatpush3.xpose.msra.mxu1 %v297_v8 }
 0x1dc   :  { %498 = vmatmul.mubr.f32.vlgmr.msra.gmra.mrb[4].mxu1 %v298_v24 }
 0x2af   :  { %v365_v36 = vpop.f32.mrb[4].mxu1 }
 0x2b0   :  { %v385_v38 = vadd.f32 %v384_v35, %v365_v36  ;;  %v499_v39 = vpop.f32.mrb[5].mxu1 }
 0x2b2   :  { %v393_v40 = vadd.f32 %v391_v37, %v385_v38 }
 0x2b4   :  { %395 = vst.msk [vmem:[#allocation2 - $0x2] sm:$0x4] %vm394_vm4, %v393_v40 }
 0x2b5   :  { %567 = shalt.err (!%p564_p4)
}
 0x2b6   :  { %s568_s25 = scalar_lea.hbm %s804_s5, 16 }
 0x2b7   :  { %p569_p5 = scmp.ne.s32.totalorder %s804_s5, %s568_s25  ;;  %p572_p6 = scmp.lt.u32.totalorder %s568_s25, %s804_s5 }
 0x2b9   :  { %p574_p7 = pnand %p572_p6, %p569_p5 }
 0x2bb   :  { %577 = shalt.err (!%p574_p7)
}
 0x2bc   :  { %405 = dma.vmem_to_hbm [thread:$0]  %s403_s22, 16, %s804_s5, [#allocation3]  }
 0x2bd   :  { %578 = dma.done.wait [#allocation3], 16  }
 0x2be   :  { %579 = vsyncadd [#allocation3], 4294967280 }
 0x2bf   :  { %409 = vsyncpa [#allocation3], 1 }

</bundles_post_ra>
